<compile_context>
chip_gen: v5e
topology: v5e:2x2
jax: 0.10.0
libtpu: 0.0.40
codegen_flags: <defaults>
</compile_context>

<pallas_src>
import jax
import jax.numpy as jnp
from jax.experimental import pallas as pl
from jax.experimental.pallas import tpu as pltpu


def _round_up(x, m):
    return (x + m - 1) // m * m


def mlp_normalize_kernel(x_ref, w_ref, b_ref, o_ref):
    # Linear: y = x @ W^T + b, accumulated in f32 on the MXU.
    y = jax.lax.dot_general(
        x_ref[...], w_ref[...],
        dimension_numbers=(((1,), (1,)), ((), ())),   # contract in_features dims
        preferred_element_type=jnp.float32)
    y = y + b_ref[...]                                 # (1, Hp) broadcasts over rows
    # F.normalize(y, dim=-1): y / max(||y||, 1e-12) == y * rsqrt(max(sum(y^2), 1e-24)).
    # rsqrt runs on the EUP slot; the per-element divide becomes a VPU multiply.
    ss = jnp.sum(y * y, axis=-1, keepdims=True)
    inv = jax.lax.rsqrt(jnp.maximum(ss, 1e-24))
    o_ref[...] = (y * inv).astype(o_ref.dtype)


def mlp_forward(x, weight, bias, *, block_rows=256, matmul_dtype=None):
    """Fused Linear + L2-normalize.

    x      : (B, H) activations
    weight : (H, H) in PyTorch (out_features, in_features) order -- NOT transposed
    bias   : (H,)
    matmul_dtype : optional MXU operand dtype (e.g. jnp.bfloat16 on v6e/v7x);
                   accumulation and normalization stay f32.
    """
    B, H = x.shape
    out_dtype = x.dtype

    # Pad the lane (last) dim to a multiple of 128 so stores are unmasked and the
    # MXU result columns are fully used; pad rows up to the row-tile.
    Hp = _round_up(H, 128)
    TB = min(_round_up(block_rows, 8), _round_up(B, 8))
    Bp = _round_up(B, TB)

    # NOTE: at production sizes the weight/bias should be stored pre-padded once at
    # model init; padding here only keeps the toy example self-contained.
    x_p = jnp.pad(x, ((0, Bp - B), (0, Hp - H)))
    w_p = jnp.pad(weight, ((0, Hp - H), (0, Hp - H)))
    b_p = jnp.pad(bias, (0, Hp - H)).reshape(1, Hp)

    if matmul_dtype is not None:
        x_p = x_p.astype(matmul_dtype)
        w_p = w_p.astype(matmul_dtype)

    grid = (Bp // TB,)

    # Weight and bias blocks never change across the grid -> keep them resident
    # and single-buffered (no redundant second VMEM copy).
    w_spec = pl.BlockSpec((Hp, Hp), lambda i: (0, 0), pipeline_mode=pl.Buffered(1))
    b_spec = pl.BlockSpec((1, Hp), lambda i: (0, 0), pipeline_mode=pl.Buffered(1))

    out = pl.pallas_call(
        mlp_normalize_kernel,
        out_shape=jax.ShapeDtypeStruct((Bp, Hp), out_dtype),
        grid_spec=pltpu.PrefetchScalarGridSpec(
            num_scalar_prefetch=0,
            grid=grid,
            in_specs=[
                pl.BlockSpec((TB, Hp), lambda i: (i, 0)),  # row tile of x
                w_spec,
                b_spec,
            ],
            out_specs=pl.BlockSpec((TB, Hp), lambda i: (i, 0)),
        ),
        compiler_params=pltpu.CompilerParams(
            # Rows are independent: shard the batch grid across TensorCores
            # (required to use the 2nd core on v7x).
            dimension_semantics=("parallel",)),
    )(x_p, w_p, b_p)
    # TODO(synk): for H >~ 4096 on v7x (64 MiB VMEM) add a K-reduction grid axis
    # (f32 accumulator scratch + pl.when init/finalize) instead of a resident HxH weight.
    return out[:B, :H]


if __name__ == "__main__":
    hid = 32
    batch = 8

    key = jax.random.PRNGKey(0)
    kx, kw, kb = jax.random.split(key, 3)

    # Deterministic init mimicking nn.Linear's uniform(-1/sqrt(in), 1/sqrt(in))
    bound = 1.0 / (hid ** 0.5)
    weight = jax.random.uniform(kw, (hid, hid), jnp.float32, -bound, bound)  # (out, in)
    bias = jax.random.uniform(kb, (hid,), jnp.float32, -bound, bound)
    x = jax.random.normal(kx, (batch, hid), jnp.float32)

    # Reference in plain JAX (same math as the PyTorch module).
    ref = x @ weight.T + bias
    ref = ref / jnp.maximum(
        jnp.sqrt(jnp.sum(ref * ref, axis=-1, keepdims=True)), 1e-12)

    # f32 operands: tight check.
    out = jax.block_until_ready(mlp_forward(x, weight, bias))
    assert out.shape == (batch, hid)
    assert jnp.allclose(out, ref, atol=1e-5, rtol=1e-5), "f32 mismatch vs reference"

    # bf16 MXU operands (production setting on v6e/v7x): loose check.
    out_bf16 = jax.block_until_ready(
        mlp_forward(x, weight, bias, matmul_dtype=jnp.bfloat16))
    assert jnp.allclose(out_bf16, ref, atol=3e-2, rtol=3e-2), "bf16 mismatch vs reference"

    print("KERNEL_OK")
</pallas_src>

<mosaic_0001>
module attributes {stable_mosaic.version = 11 : i64} {
  func.func @mlp_normalize_kernel(%arg0: i32, %arg1: memref<8x128xf32, #tpu.memory_space<vmem>>, %arg2: memref<128x128xf32, #tpu.memory_space<vmem>>, %arg3: memref<1x128xf32, #tpu.memory_space<vmem>>, %arg4: memref<8x128xf32, #tpu.memory_space<vmem>>) attributes {dimension_semantics = [#tpu.dimension_semantics<parallel>], iteration_bounds = array<i64: 1>, scalar_prefetch = 0 : i64, scratch_operands = 0 : i64, tpu.core_type = #tpu.core_type<tc>, window_params = [{transform_indices = @transform_0, window_bounds = array<i64: 8, 128>}, {pipeline_mode = #tpu.pipeline_mode<synchronous>, transform_indices = @transform_1, window_bounds = array<i64: 128, 128>}, {pipeline_mode = #tpu.pipeline_mode<synchronous>, transform_indices = @transform_2, window_bounds = array<i64: 1, 128>}, {transform_indices = @transform_3, window_bounds = array<i64: 8, 128>}]} {
    %c0 = arith.constant 0 : index
    %c0_0 = arith.constant 0 : index
    %0 = vector.load %arg1[%c0, %c0_0] : memref<8x128xf32, #tpu.memory_space<vmem>>, vector<8x128xf32>
    %c0_1 = arith.constant 0 : index
    %c0_2 = arith.constant 0 : index
    %1 = vector.load %arg2[%c0_1, %c0_2] : memref<128x128xf32, #tpu.memory_space<vmem>>, vector<128x128xf32>
    %cst = arith.constant dense<0.000000e+00> : vector<8x128xf32>
    %2 = tpu.matmul %0, %1, %cst {dimension_numbers = #tpu.dot_dimension_numbers<[1], [1], [0], [0], [0, 0, 1, 0], [], []>} : vector<8x128xf32>, vector<128x128xf32>, vector<8x128xf32> -> vector<8x128xf32>
    %c0_3 = arith.constant 0 : index
    %c0_4 = arith.constant 0 : index
    %3 = vector.load %arg3[%c0_3, %c0_4] : memref<1x128xf32, #tpu.memory_space<vmem>>, vector<1x128xf32>
    %4 = vector.broadcast %3 : vector<1x128xf32> to vector<8x128xf32>
    %5 = arith.addf %2, %4 : vector<8x128xf32>
    %6 = arith.mulf %5, %5 : vector<8x128xf32>
    %cst_5 = arith.constant dense<0.000000e+00> : vector<8xf32>
    %7 = vector.multi_reduction <add>, %6, %cst_5 [1] : vector<8x128xf32> to vector<8xf32>
    %8 = vector.shape_cast %7 : vector<8xf32> to vector<8x1xf32>
    %cst_6 = arith.constant 1.000000e-24 : f32
    %9 = vector.broadcast %cst_6 : f32 to vector<8x1xf32>
    %10 = arith.maximumf %8, %9 : vector<8x1xf32>
    %11 = math.rsqrt %10 : vector<8x1xf32>
    %12 = vector.broadcast %11 : vector<8x1xf32> to vector<8x128xf32>
    %13 = arith.mulf %5, %12 : vector<8x128xf32>
    %c0_7 = arith.constant 0 : index
    %c0_8 = arith.constant 0 : index
    %14 = vector.load %arg4[%c0_7, %c0_8] : memref<8x128xf32, #tpu.memory_space<vmem>>, vector<8x128xf32>
    tpu.vector_store %arg4[%c0_7, %c0_8], %13 {strides = array<i32>} : memref<8x128xf32, #tpu.memory_space<vmem>>, vector<8x128xf32>,
    return
  }
  func.func @transform_0(%arg0: i32) -> (i32, i32) {
    %c0_i32 = arith.constant 0 : i32
    %c0_i32_0 = arith.constant 0 : i32
    return %arg0, %c0_i32 : i32, i32
  }
  func.func @transform_1(%arg0: i32) -> (i32, i32) {
    %c0_i32 = arith.constant 0 : i32
    %c0_i32_0 = arith.constant 0 : i32
    %c0_i32_1 = arith.constant 0 : i32
    return %c0_i32, %c0_i32_0 : i32, i32
  }
  func.func @transform_2(%arg0: i32) -> (i32, i32) {
    %c0_i32 = arith.constant 0 : i32
    %c0_i32_0 = arith.constant 0 : i32
    %c0_i32_1 = arith.constant 0 : i32
    return %c0_i32, %c0_i32_0 : i32, i32
  }
  func.func @transform_3(%arg0: i32) -> (i32, i32) {
    %c0_i32 = arith.constant 0 : i32
    %c0_i32_0 = arith.constant 0 : i32
    return %arg0, %c0_i32 : i32, i32
  }
}

</mosaic_0001>

<bundles_post_ra>
// kernel: tpu_custom_call.1
= control target key start
LH: loop header
LB: loop body
LE: loop exit
PB: predicated region body
PF: predicated region fallthrough
CT: control target
= control target key end

     0   :  { %8 = vsyncpa [#allocation3], 0  ;;  %s243_s0 = inlined_call_operand.hbm [shape: f32[8,128], index: 0, kind: input, shape index: {}]   ;;  %s244_s1 = inlined_call_operand.hbm [shape: f32[128,128], index: 1, kind: input, shape index: {}]   ;;  %s245_s2 = inlined_call_operand.vmem [shape: f32[1,128], index: 2, kind: input, shape index: {}]   ;;  %s246_s3 = inlined_call_operand.hbm [shape: f32[8,128], index: 3, kind: output, shape index: {}]  }
   0x1   :  { %9 = vsyncpa [#allocation6], 0 }
   0x2   :  { %10 = vsyncpa [#allocation4], 0  ;;  %s16_s14 = sshll.u32 %s243_s0, 4  ;;  %s206_s15 = smov [#allocation2]   ;;  %s17_s14 = int_to_ptr.hbm [resolvable:$true] %s16_s14 }
   0x3   :  { %s18_s16 = sshll.u32 %s206_s15, 4  ;;  %s26_s19 = sshll.u32 %s244_s1, 4  ;;  %s19_s16 = int_to_ptr.vmem [resolvable:$true] %s18_s16  ;;  %s27_s19 = int_to_ptr.hbm [resolvable:$true] %s26_s19 }
   0x4   :  { %21 = dma.hbm_to_vmem [thread:$0]  %s17_s14, 128, %s19_s16, [#allocation3]  }
   0x5   :  { %s207_s20 = smov [#allocation5]   ;;  %s208_s22 = smov 128  }
   0x6   :  { %s28_s21 = sshll.u32 %s207_s20, 4  ;;  %s209_s23 = smov 8   ;;  %s29_s21 = int_to_ptr.vmem [resolvable:$true] %s28_s21 }
   0x7   :  { %34 = dma.hbm_to_vmem [thread:$0]  %s27_s19, 2048, %s29_s21, [#allocation6], %s208_s22, %s208_s22, %s209_s23  }
   0x8   :  { %200 = dma.done.wait [#allocation3], 128  }
   0x9   :  { %201 = vsyncadd [#allocation3], 4294967168 }
   0xa   :  { %202 = dma.done.wait [#allocation6], 2048  }
   0xb   :  { %203 = vsyncadd [#allocation6], 4294965248  ;;  %v61_v0 = vld [vmem:[#allocation5 + $0x78] sm:$0xff]  ;;  %v60_v1 = vld [vmem:[#allocation5 + $0x70] sm:$0xff]  ;;  %s210_s24 = smov [#allocation7]  }
   0xc   :  { %66 = vmatpush.xpose.msra.mxu0 %v61_v0  ;;  %v59_v2 = vld [vmem:[#allocation5 + $0x68] sm:$0xff]  ;;  %v58_v3 = vld [vmem:[#allocation5 + $0x60] sm:$0xff]  ;;  %v57_v4 = vld [vmem:[#allocation5 + $0x58] sm:$0xff]  ;;  %s107_s25 = sshll.u32 %s210_s24, 4  ;;  %s108_s25 = int_to_ptr.vmem [resolvable:$true] %s107_s25 }
   0xd   :  { %v56_v5 = vld [vmem:[#allocation5 + $0x50] sm:$0xff]  ;;  %v55_v6 = vld [vmem:[#allocation5 + $0x48] sm:$0xff]  ;;  %v54_v7 = vld [vmem:[#allocation5 + $0x40] sm:$0xff] }
   0xe   :  { %v53_v8 = vld [vmem:[#allocation5 + $0x38] sm:$0xff]  ;;  %v52_v9 = vld [vmem:[#allocation5 + $0x30] sm:$0xff]  ;;  %v51_v10 = vld [vmem:[#allocation5 + $0x28] sm:$0xff] }
   0xf   :  { %v50_v11 = vld [vmem:[#allocation5 + $0x20] sm:$0xff]  ;;  %v49_v12 = vld [vmem:[#allocation5 + $0x18] sm:$0xff]  ;;  %v48_v13 = vld [vmem:[#allocation5 + $0x10] sm:$0xff] }
  0x10   :  { %67 = vmatpush.xpose.msra.mxu0 %v60_v1  ;;  %v47_v14 = vld [vmem:[#allocation5 + $0x8] sm:$0xff]  ;;  %v46_v15 = vld [vmem:[#allocation5] sm:$0xff]  ;;  %v45_v16 = vld [vmem:[#allocation2] sm:$0xff] }
  0x11   :  { %v125_v17 = vld [vmem:[%s245_s2] ss:$0 sm:$0xff]  ;;  %s109_s2 = sshll.u32 %s246_s3, 4  ;;  %s110_s2 = int_to_ptr.hbm [resolvable:$true] %s109_s2 }
  0x14   :  { %68 = vmatpush.xpose.msra.mxu0 %v59_v2 }
  0x18   :  { %69 = vmatpush.xpose.msra.mxu0 %v58_v3 }
  0x1c   :  { %70 = vmatpush.xpose.msra.mxu0 %v57_v4 }
  0x20   :  { %71 = vmatpush.xpose.msra.mxu0 %v56_v5 }
  0x24   :  { %72 = vmatpush.xpose.msra.mxu0 %v55_v6 }
  0x28   :  { %73 = vmatpush.xpose.msra.mxu0 %v54_v7 }
  0x2c   :  { %74 = vmatpush.xpose.msra.mxu0 %v53_v8 }
  0x30   :  { %75 = vmatpush.xpose.msra.mxu0 %v52_v9 }
  0x34   :  { %76 = vmatpush.xpose.msra.mxu0 %v51_v10 }
  0x38   :  { %77 = vmatpush.xpose.msra.mxu0 %v50_v11 }
  0x3c   :  { %78 = vmatpush.xpose.msra.mxu0 %v49_v12 }
  0x40   :  { %79 = vmatpush.xpose.msra.mxu0 %v48_v13 }
  0x44   :  { %80 = vmatpush.xpose.msra.mxu0 %v47_v14 }
  0x48   :  { %81 = vmatpush.xpose.msra.mxu0 %v46_v15 }
  0x4b   :  { %82 = vmatmul.f32.vlgmr.msra.gmra.mxu0 %v45_v16 }
  0xc8   :  { %v83_v18 = vpop.f32.mrf.mxu0 }
  0xc9   :  { %v84_v19 = vadd.f32 %v125_v17, %v83_v18 }
  0xcb   :  { %v86_v20 = vmul.f32 %v84_v19, %v84_v19 }
  0xcd   :  { %87 = vadd.xlane.f32.xlu0 %v86_v20 }
 0x140   :  { %v88_v21 = vpop.xlane.xlu0 %87 }
 0x141   :  { %v89_v22 = vmax.f32 %v88_v21, 1e-24 }
 0x143   :  { %126 = vrsqrt.f32 %v89_v22  ;;  %vm96_vm1 = vweird.f32 %v89_v22 }
 0x149   :  { %v127_v23 = vpop.eup %126 }
 0x14a   :  { %v91_v24 = vmul.f32 %v127_v23, %v89_v22  ;;  %vm97_vm0 = vweird.f32 %v127_v23 }
 0x14b   :  { %vm98_vm2 = vmor %vm96_vm1, %vm97_vm0 }
 0x14c   :  { %v92_v25 = vmul.f32 %v127_v23, %v91_v24 }
 0x14e   :  { %v93_v26 = vmul.f32 0.5, %v92_v25 }
 0x150   :  { %v94_v27 = vsub.f32 1.5, %v93_v26 }
 0x152   :  { %v95_v28 = vmul.f32 %v127_v23, %v94_v27 }
 0x154   :  { %v99_v29 = vsel %vm98_vm2, %v127_v23, %v95_v28 }
 0x155   :  { %v100_v30 = vmul.f32 %v99_v29, %v84_v19 }
 0x157   :  { %101 = vst [vmem:[#allocation7] sm:$0xff] %v100_v30 }
 0x158   :  { %112 = dma.vmem_to_hbm [thread:$0]  %s108_s25, 128, %s110_s2, [#allocation4]  }
 0x159   :  { %204 = dma.done.wait [#allocation4], 128  }
 0x15a   :  { %205 = vsyncadd [#allocation4], 4294967168 }
 0x15b   :  { %117 = vsyncpa [#allocation3], 1 }
 0x15c   :  { %118 = vsyncpa [#allocation6], 1 }
 0x15d   :  { %119 = vsyncpa [#allocation4], 1 }

</bundles_post_ra>
